<compile_context>
chip_gen: v6e
topology: v6e:2x2x1
jax: 0.10.0
libtpu: 0.0.40
codegen_flags: <defaults>
</compile_context>

<pallas_src>
import functools

import jax
import jax.numpy as jnp
from jax.experimental import pallas as pl
from jax.experimental.pallas import tpu as pltpu


# ----------------------------------------------------------------------------
# Pallas kernel: conv1x1 (as matmul) + bias + fused concat of positional enc.
# ----------------------------------------------------------------------------
def _conv1x1_concat_kernel(x_ref, w_ref, b_ref, pos_ref, out_ref, *, c_out):
    # x_ref  : [1, TM, C_in]      (one batch element, TM rows of the flattened grid)
    # w_ref  : [C_in, C_out]
    # b_ref  : [1, C_out]
    # pos_ref: [TM, n_pos]        (shared across the batch)
    # out_ref: [1, TM, C_out + n_pos]
    x = x_ref[0]                                              # [TM, C_in]
    conv = jnp.dot(x, w_ref[...],
                   preferred_element_type=jnp.float32) + b_ref[...]
    # Two direct sub-slice stores instead of a concatenate (no lane shuffle).
    out_ref[0, :, :c_out] = conv.astype(out_ref.dtype)
    out_ref[0, :, c_out:] = pos_ref[...].astype(out_ref.dtype)


# ----------------------------------------------------------------------------
# Glue: Fourier position encoding (no parameters, deterministic).
# ----------------------------------------------------------------------------
def _build_linear_positions(index_dims):
    ranges = [jnp.linspace(-1.0, 1.0, d, dtype=jnp.float32) for d in index_dims]
    grids = jnp.meshgrid(*ranges, indexing="ij")
    return jnp.stack(grids, axis=-1).reshape(-1, len(index_dims))     # [N, d]


def _fourier_position_encoding(index_dims, num_bands=4):
    pos = _build_linear_positions(index_dims)                          # [N, d]
    freqs = jnp.stack(
        [jnp.linspace(1.0, r / 2.0, num_bands, dtype=jnp.float32) for r in index_dims],
        axis=0,
    )                                                                  # [d, nb]
    per_pos = (pos[:, :, None] * freqs[None, :, :]).reshape(pos.shape[0], -1)
    feats = jnp.concatenate(
        [jnp.sin(jnp.pi * per_pos), jnp.cos(jnp.pi * per_pos)], axis=-1)
    # concat_pos=True, sine_only=False -> d * (2*num_bands + 1) channels
    return jnp.concatenate([pos, feats], axis=-1)                      # [N, n_pos]


# ----------------------------------------------------------------------------
# Wrapper: ImagePreprocessor.forward for prep_type="conv1x1", concat pos enc.
# ----------------------------------------------------------------------------
def image_preprocessor_forward(inputs, weight, bias, *, spatial_downsample=4,
                               num_bands=4, tile_rows=512,
                               compute_dtype=jnp.float32):
    """inputs: [B, C, H, W] float32 (NCHW, same convention as the torch module).

    weight: [C_in, C_out] (torch conv1x1 weight [C_out, C_in, 1, 1] pre-transposed).
    Returns (inputs_with_pos [B, N, C_out + n_pos], inputs_without_pos [B, N, C_out]).
    """
    B, C, H, W = inputs.shape
    s = spatial_downsample
    # 1x1 conv with stride s only looks at pixels on the stride grid.
    x = inputs[:, :, ::s, ::s]                                         # [B, C, h, w]
    h, w_sp = x.shape[2], x.shape[3]
    N = h * w_sp
    # movedim(-3, -1) + flatten spatial dims -> matmul rows, kept per-batch.
    x3 = jnp.transpose(x, (0, 2, 3, 1)).reshape(B, N, C).astype(compute_dtype)

    C_out = weight.shape[1]
    pos_enc = _fourier_position_encoding([h, w_sp], num_bands=num_bands)  # [N, n_pos]
    n_pos = pos_enc.shape[-1]
    C_total = C_out + n_pos

    # Row tile: biggest of (tile_rows, N); multiple of 8 or the full dim.
    TM = N if N <= tile_rows else tile_rows
    n_row_tiles = pl.cdiv(N, TM)

    kernel = functools.partial(_conv1x1_concat_kernel, c_out=C_out)

    full = pl.pallas_call(
        kernel,
        grid=(n_row_tiles, B),           # batch innermost: pos block reused per b
        in_specs=[
            pl.BlockSpec((1, TM, C), lambda i, b: (b, i, 0)),
            pl.BlockSpec((C, C_out), lambda i, b: (0, 0)),
            pl.BlockSpec((1, C_out), lambda i, b: (0, 0)),
            pl.BlockSpec((TM, n_pos), lambda i, b: (i, 0)),   # shared across batch
        ],
        out_specs=pl.BlockSpec((1, TM, C_total), lambda i, b: (b, i, 0)),
        out_shape=jax.ShapeDtypeStruct((B, N, C_total), jnp.float32),
        compiler_params=pltpu.CompilerParams(
            dimension_semantics=("parallel", "parallel")),
    )(x3, weight.astype(compute_dtype), bias.reshape(1, C_out).astype(jnp.float32),
      pos_enc)

    inputs_with_pos = full
    inputs_without_pos = full[..., :C_out]       # lazy slice; no duplicate HBM write
    return inputs_with_pos, inputs_without_pos


if __name__ == "__main__":
    # Small deterministic setup consistent with the module's __init__.
    B, C_IN, H, W = 2, 4, 16, 16
    SPATIAL_DOWNSAMPLE = 4
    NUM_CHANNELS = 32          # conv1x1 output channels
    NUM_BANDS = 4

    key = jax.random.PRNGKey(0)
    k_x, k_w = jax.random.split(key)

    inputs = jax.random.normal(k_x, (B, C_IN, H, W), dtype=jnp.float32)

    # conv1x1 weight: torch shape [C_out, C_in, 1, 1], trunc_normal_(std=0.01);
    # stored pre-transposed as [C_in, C_out]. Bias = 0.
    weight = 0.01 * jax.random.truncated_normal(
        k_w, -2.0, 2.0, (C_IN, NUM_CHANNELS), dtype=jnp.float32)
    bias = jnp.zeros((NUM_CHANNELS,), dtype=jnp.float32)

    with_pos, without_pos = image_preprocessor_forward(
        inputs, weight, bias,
        spatial_downsample=SPATIAL_DOWNSAMPLE, num_bands=NUM_BANDS)
    jax.block_until_ready((with_pos, without_pos))

    # Shape sanity checks (N = (H/s)*(W/s) = 16, n_pos = 2*(2*4+1) = 18).
    h, w_sp = H // SPATIAL_DOWNSAMPLE, W // SPATIAL_DOWNSAMPLE
    N = h * w_sp
    n_pos = 2 * (2 * NUM_BANDS + 1)
    assert with_pos.shape == (B, N, NUM_CHANNELS + n_pos)
    assert without_pos.shape == (B, N, NUM_CHANNELS)

    # Reference check of the fused kernel (matmul + bias + concat) in plain JAX.
    x_ref = jnp.transpose(
        inputs[:, :, ::SPATIAL_DOWNSAMPLE, ::SPATIAL_DOWNSAMPLE], (0, 2, 3, 1)
    ).reshape(B, N, C_IN)
    ref_nopos = x_ref @ weight + bias[None, None, :]
    ref_pos = _fourier_position_encoding([h, w_sp], num_bands=NUM_BANDS)
    ref_full = jnp.concatenate(
        [ref_nopos, jnp.broadcast_to(ref_pos[None], (B, N, n_pos))], axis=-1)

    assert jnp.allclose(without_pos, ref_nopos, atol=1e-5, rtol=1e-5)
    assert jnp.allclose(with_pos, ref_full, atol=1e-5, rtol=1e-5)

    print("KERNEL_OK")
</pallas_src>

<mosaic_0001>
module attributes {stable_mosaic.version = 11 : i64} {
  func.func @_conv1x1_concat_kernel(%arg0: i32, %arg1: i32, %arg2: memref<1x16x4xf32, #tpu.memory_space<vmem>>, %arg3: memref<4x32xf32, #tpu.memory_space<vmem>>, %arg4: memref<1x32xf32, #tpu.memory_space<vmem>>, %arg5: memref<16x18xf32, #tpu.memory_space<vmem>>, %arg6: memref<1x16x50xf32, #tpu.memory_space<vmem>>) attributes {dimension_semantics = [#tpu.dimension_semantics<parallel>, #tpu.dimension_semantics<parallel>], iteration_bounds = array<i64: 1, 2>, scalar_prefetch = 0 : i64, scratch_operands = 0 : i64, tpu.core_type = #tpu.core_type<tc>, window_params = [{transform_indices = @transform_0, window_bounds = array<i64: 1, 16, 4>}, {pipeline_mode = #tpu.pipeline_mode<synchronous>, transform_indices = @transform_1, window_bounds = array<i64: 4, 32>}, {pipeline_mode = #tpu.pipeline_mode<synchronous>, transform_indices = @transform_2, window_bounds = array<i64: 1, 32>}, {transform_indices = @transform_3, window_bounds = array<i64: 16, 18>}, {transform_indices = @transform_4, window_bounds = array<i64: 1, 16, 50>}]} {
    %c0 = arith.constant 0 : index
    %c0_0 = arith.constant 0 : index
    %c0_1 = arith.constant 0 : index
    %0 = vector.load %arg2[%c0, %c0_0, %c0_1] : memref<1x16x4xf32, #tpu.memory_space<vmem>>, vector<1x16x4xf32>
    %1 = vector.shape_cast %0 : vector<1x16x4xf32> to vector<16x4xf32>
    %c0_2 = arith.constant 0 : index
    %c0_3 = arith.constant 0 : index
    %2 = vector.load %arg3[%c0_2, %c0_3] : memref<4x32xf32, #tpu.memory_space<vmem>>, vector<4x32xf32>
    %cst = arith.constant dense<0.000000e+00> : vector<16x32xf32>
    %3 = tpu.matmul %1, %2, %cst {dimension_numbers = #tpu.dot_dimension_numbers<[1], [0], [0], [1], [0, 0, 1, 1], [], []>} : vector<16x4xf32>, vector<4x32xf32>, vector<16x32xf32> -> vector<16x32xf32>
    %c0_4 = arith.constant 0 : index
    %c0_5 = arith.constant 0 : index
    %4 = vector.load %arg4[%c0_4, %c0_5] : memref<1x32xf32, #tpu.memory_space<vmem>>, vector<1x32xf32>
    %5 = vector.broadcast %4 : vector<1x32xf32> to vector<16x32xf32>
    %6 = arith.addf %3, %5 : vector<16x32xf32>
    %c0_6 = arith.constant 0 : index
    %c0_7 = arith.constant 0 : index
    %c0_8 = arith.constant 0 : index
    %7 = vector.load %arg6[%c0_6, %c0_7, %c0_8] : memref<1x16x50xf32, #tpu.memory_space<vmem>>, vector<1x16x32xf32>
    %8 = vector.shape_cast %7 : vector<1x16x32xf32> to vector<16x32xf32>
    %9 = vector.shape_cast %6 : vector<16x32xf32> to vector<1x16x32xf32>
    tpu.vector_store %arg6[%c0_6, %c0_7, %c0_8], %9 {strides = array<i32>} : memref<1x16x50xf32, #tpu.memory_space<vmem>>, vector<1x16x32xf32>,
    %c0_9 = arith.constant 0 : index
    %c0_10 = arith.constant 0 : index
    %10 = vector.load %arg5[%c0_9, %c0_10] : memref<16x18xf32, #tpu.memory_space<vmem>>, vector<16x18xf32>
    %c0_11 = arith.constant 0 : index
    %c0_12 = arith.constant 0 : index
    %c32 = arith.constant 32 : index
    %11 = vector.load %arg6[%c0_11, %c0_12, %c32] : memref<1x16x50xf32, #tpu.memory_space<vmem>>, vector<1x16x18xf32>
    %12 = vector.shape_cast %11 : vector<1x16x18xf32> to vector<16x18xf32>
    %13 = vector.shape_cast %10 : vector<16x18xf32> to vector<1x16x18xf32>
    tpu.vector_store %arg6[%c0_11, %c0_12, %c32], %13 {strides = array<i32>} : memref<1x16x50xf32, #tpu.memory_space<vmem>>, vector<1x16x18xf32>,
    return
  }
  func.func @transform_0(%arg0: i32, %arg1: i32) -> (i32, i32, i32) {
    %c0_i32 = arith.constant 0 : i32
    %c0_i32_0 = arith.constant 0 : i32
    return %arg1, %arg0, %c0_i32 : i32, i32, i32
  }
  func.func @transform_1(%arg0: i32, %arg1: i32) -> (i32, i32) {
    %c0_i32 = arith.constant 0 : i32
    %c0_i32_0 = arith.constant 0 : i32
    %c0_i32_1 = arith.constant 0 : i32
    return %c0_i32, %c0_i32_0 : i32, i32
  }
  func.func @transform_2(%arg0: i32, %arg1: i32) -> (i32, i32) {
    %c0_i32 = arith.constant 0 : i32
    %c0_i32_0 = arith.constant 0 : i32
    %c0_i32_1 = arith.constant 0 : i32
    return %c0_i32, %c0_i32_0 : i32, i32
  }
  func.func @transform_3(%arg0: i32, %arg1: i32) -> (i32, i32) {
    %c0_i32 = arith.constant 0 : i32
    %c0_i32_0 = arith.constant 0 : i32
    return %arg0, %c0_i32 : i32, i32
  }
  func.func @transform_4(%arg0: i32, %arg1: i32) -> (i32, i32, i32) {
    %c0_i32 = arith.constant 0 : i32
    %c0_i32_0 = arith.constant 0 : i32
    return %arg1, %arg0, %c0_i32 : i32, i32, i32
  }
}

</mosaic_0001>

<bundles_post_ra>
// kernel: tpu_custom_call.1
= control target key start
LH: loop header
LB: loop body
LE: loop exit
PB: predicated region body
PF: predicated region fallthrough
CT: control target
= control target key end

     0   :  { %9 = vsyncpa [#allocation3], 0  ;;  %s790_s0 = inlined_call_operand.vmem [shape: f32[2,16,4], index: 0, kind: input, shape index: {}]   ;;  %s791_s1 = inlined_call_operand.vmem [shape: f32[4,32], index: 1, kind: input, shape index: {}]   ;;  %s792_s2 = inlined_call_operand.vmem [shape: f32[1,32], index: 2, kind: input, shape index: {}]   ;;  %s793_s3 = inlined_call_operand.vmem [shape: f32[16,18], index: 3, kind: input, shape index: {}]   ;;  %s794_s4 = inlined_call_operand.hbm [shape: f32[2,16,50], index: 4, kind: output, shape index: {}]  }
   0x1   :  { %11 = vsyncpa [#allocation3 + $0x1], 0  ;;  %s664_s15 = smov 0   ;;  %s666_s16 = smov 0  }
   0x2   :  { %s668_s17 = smov 0   ;;  %s670_s18 = smov 0  }
   0x3   :  { %s672_s19 = smov 0   ;;  %s674_s20 = smov 0  }
   0x4 LB: > { %s471_s21 = sadd.s32 4294967295, %s633_s20   ;;  %s472_s22 = sadd.s32 4294967294, %s633_s20   ;;  %s633_s20 = sphi %s674_s20, %s17_s20   ;;  %s629_s19 = sphi %s672_s19, %s801_s19   ;;  %s625_s18 = sphi %s670_s18, %s800_s18   ;;  %s621_s17 = sphi %s668_s17, %s799_s17   ;;  %s617_s16 = sphi %s666_s16, %s798_s16   ;;  %s613_s15 = sphi %s664_s15, %s797_s15  }
   0x5   : > { %s26_s23 = sadd.s32 1, %s629_s19  ;;  %s134_s24 = sadd.s32 1, %s621_s17 }
   0x6   : > { %p27_p0 = scmp.ge.s32.totalorder %s26_s23, 2  ;;  %p144_p1 = scmp.ne.s32.totalorder %s621_s17, %s617_s16 }
   0x7   : > { %p145_p2 = scmp.eq.s32.totalorder %s471_s21, 1  ;;  %p150_p3 = scmp.ne.s32.totalorder %s617_s16, %s613_s15 }
   0x8   : > { %s803_s23 = smov (%p27_p0, %s26_s23), 0  ;;  %p151_p5 = scmp.eq.s32.totalorder %s472_s22, 1 }
   0x9   : > { %p704_p4 = por %p145_p2, %p144_p1  ;;  %s129_s26 = ssub.s32 %s629_s19, %s803_s23 }
   0xa   : > { %p476_p6 = scmp.ge.s32.totalorder %s633_s20, 1  ;;  %p132_p7 = scmp.eq.s32.totalorder %s129_s26, 0 }
   0xb   : > { %p711_p8 = por %p151_p5, %p150_p3  ;;  %p197_p9 = scmp.lt.s32.totalorder %s633_s20, 3 }
   0xc   : > { %s717_s28 = scalar_select %p132_p7, %s621_s17, %s134_s24  }
   0xd   : > { %p198_p10 = pnand %p476_p6, %p197_p9 }
   0xe   : > { %p233_p11 = scmp.lt.s32.totalorder (!%p198_p10), %s625_s18, 1  ;;  %s635_s8 = smov (!%p198_p10), 32  }
   0xf   : > { %201 = sbr.rel (%p198_p10) target bundleno = 238 (0xee), region = 36  ;;  %s229_s21 = sand.u32 (!%p198_p10), 1, %s617_s16  }
  0x10   : > { %s477_s22 = sshll.u32 (!%p198_p10), %s229_s21, 4  ;;  %s490_s29 = sshll.u32 (!%p198_p10), %s625_s18, 8 }
  0x11   : > { %s231_s30 = scalar_lea.vmem (!%p198_p10), [#allocation2], %s477_s22  ;;  %s636_s10 = smov (!%p198_p10), [#allocation2]  }
  0x12   : > { %s377_s5 = sshll.u32 (!%p198_p10), %s231_s30, 4  ;;  %s743_s5 = int_to_ptr.vmem [resolvable:$true] %s377_s5 }
  0x13   : > { %s557_s9 = scalar_lea.vmem (!%p198_p10), %s743_s5, 256 }
  0x14   : > { %v251_v0 = vld [vmem:[%s791_s1] sm:$0xf]  ;;  %vm266_vm0 = vcmask 1043456   ;;  %s234_s7 = scalar_select %p233_p11, %s625_s18, 1  ;;  %v349_v2 = vld [vmem:[%s793_s3 + $0x8] sm:$0xff]  ;;  %vm259_vm1 = vcmask 31744  }
  0x15   : > { %v348_v1 = vld [vmem:[%s793_s3] sm:$0xff]  ;;  %494 = vmatprep.subr.msk.mxu0 %vm266_vm0, %v251_v0  ;;  %vm345_vm2 = vcmask 261120   ;;  %vm358_vm3 = vcmask 408832   ;;  %s745_s18 = scalar_lea.sflag [#allocation3], %s229_s21  ;;  %p558_p12 = scmp.ne.s32.totalorder %s743_s5, %s557_s9 }
  0x16   : > { %495 = vmatpush3.msk.msra.mxu0 %vm266_vm0, %v251_v0  ;;  %352 = vrot.lane.b32.xlu0 %v348_v1, %s635_s8  ;;  %s489_s11 = sshll.u32 %s234_s7, 4  ;;  %v480_v6 = vld [vmem:[%s792_s2] ss:$0 sm:$0xff] }
  0x17   : > { %s240_s14 = scalar_lea.vmem %s790_s0, %s489_s11  ;;  %p559_p13 = pnand %p558_p12, %p704_p4 }
  0x18   : > { %v249_v3 = vld [vmem:[%s240_s14] sm:$0xff]  ;;  %v250_v4 = vld [vmem:[%s240_s14 + $0x8] sm:$0xff]  ;;  %s561_s11 = sshll.u32 %s636_s10, 4  ;;  %s562_s11 = int_to_ptr.vmem [resolvable:$false] %s561_s11 }
  0x19   : > { %496 = vmatprep.mubr.msk.f32.mxu0 %vm259_vm1, %v249_v3  ;;  %p560_p0 = pneg %p559_p13  ;;  %s563_s12 = scalar_lea.vmem %s562_s11, 512 }
  0x1a   : > { %354 = vrot.lane.b32.xlu0 %v349_v2, %s635_s8  ;;  %497 = vmatmul.mubr.msk.f32.vlgmr.msra.gmra.mxu0 %vm259_vm1, %v250_v4  ;;  %s741_s8 = scalar_lea.hbm %s794_s4, %s490_s29  ;;  %p564_p1 = scmp.lt.s32.totalorder %s743_s5, %s562_s11 }
  0x1b   : > { %p565_p2 = scmp.lt.s32.totalorder %s563_s12, %s557_s9 }
  0x1d   : > { %p566_p3 = por %p565_p2, %p564_p1 }
  0x1f   : > { %p567_p5 = pnand %p566_p3, %p560_p0 }
  0x88   : > { %v353_v5 = vpop.permute.xlu0 %352 }
  0x8c   : > { %v355_v9 = vpop.permute.xlu0 %354 }
  0xda   : > { %v498_v7 = vpop.f32.mrf.mxu0 }
  0xdb   : > { %v342_v8 = vadd.f32 %v498_v7, %v480_v6 }
  0xdc   : > { %v336_v10 = vpop.f32.mrf.mxu0 }
  0xdd   : > { %347 = vst.msk [vmem:[%s231_s30 + $0x8] sm:$0xff] %vm345_vm2, %v342_v8  ;;  %v337_v11 = vadd.f32 %v480_v6, %v336_v10 }
  0xde   : > { %360 = vst.msk [vmem:[%s231_s30 + $0x8] sm:$0xff] %vm358_vm3, %v355_v9 }
  0xdf   : > { %346 = vst.msk [vmem:[%s231_s30] sm:$0xff] %vm345_vm2, %v337_v11 }
  0xe0   : > { %359 = vst.msk [vmem:[%s231_s30] sm:$0xff] %vm358_vm3, %v353_v5 }
  0xe1   : > { %570 = shalt.err (!%p567_p5)
}
  0xe2   : > { %s571_s13 = scalar_lea.hbm %s741_s8, 256  ;;  %s575_s22 = scalar_lea.hbm %s794_s4, 512 }
  0xe3   : > { %p572_p6 = scmp.ne.s32.totalorder %s741_s8, %s571_s13  ;;  %p576_p10 = scmp.lt.s32.totalorder %s741_s8, %s794_s4 }
  0xe4   : > { %p577_p11 = scmp.lt.s32.totalorder %s575_s22, %s571_s13 }
  0xe5   : > { %p573_p7 = pnand %p572_p6, %p704_p4 }
  0xe6   : > { %p578_p12 = por %p577_p11, %p576_p10 }
  0xe7   : > { %p574_p9 = pneg %p573_p7 }
  0xe9   : > { %p579_p13 = pnand %p578_p12, %p574_p9 }
  0xeb   : > { %582 = shalt.err (!%p579_p13)
}
  0xec   : > { %s637_s29 = smov 128   ;;  %s638_s30 = smov 8  }
  0xed   : > { %499 = dma.vmem_to_hbm [thread:$0]  (%p704_p4), %s743_s5, 256, %s741_s8, %s745_s18, %s637_s29, %s637_s29, %s638_s30  }
  0xee PF: > { %p505_p0 = scmp.ge.s32.totalorder %s633_s20, 2  ;;  %s392_s6 = sand.u32 1, %s613_s15  }
  0xef   : > { %s393_s7 = scalar_lea.sflag [#allocation3], %s392_s6 }
  0xf0   : > { %p502_p1 = pnand %p505_p0, %p711_p8 }
  0xf2   : > { %p503_p2 = pneg %p502_p1 }
  0xf4   : > { %608 = dma.done.wait (%p503_p2), %s393_s7, 256  }
  0xf5   : > { %610 = vsyncadd (%p503_p2), %s393_s7, 4294967040  ;;  %s17_s20 = sadd.s32 1, %s633_s20   ;;  %s797_s15 = smov %s617_s16 }
  0xf6   : > { %p14_p3 = scmp.ge.s32.totalorder %s17_s20, 4   ;;  %s798_s16 = smov %s621_s17 }
  0xf7   : > { %s799_s17 = smov %s717_s28  ;;  %s800_s18 = smov %s629_s19 }
  0xf8   : > { %s801_s19 = smov %s803_s23  ;;  %16 = sbr.rel (!%p14_p3) target bundleno = 4 (0x4), region = 74 }
  0xfd   :  { %398 = vsyncpa [#allocation3], 1 }
  0xfe   :  { %400 = vsyncpa [#allocation3 + $0x1], 1 }

</bundles_post_ra>
